<compile_context>
chip_gen: v7x
topology: tpu7x:2x2x1
jax: 0.10.0
libtpu: 0.0.40
codegen_flags: <defaults>
</compile_context>

<pallas_src>
import jax
import jax.numpy as jnp
from jax.experimental import pallas as pl
from jax.experimental.pallas import tpu as pltpu

LEN_LABELS = 33
IN_DIM = 512
HID_DIM = 128
OUT_PAD = 128            # lane-dense padded output width (>= LEN_LABELS)


def _round_up(n, m):
    return ((n + m - 1) // m) * m


def _mlp_kernel(x_ref, w1_ref, b1_ref, w2_ref, b2_ref, o_ref):
    # First linear: (tB, 512)bf16 @ (512, 128)bf16 -> f32 accumulation on MXU.
    h = jnp.dot(x_ref[...], w1_ref[...], preferred_element_type=jnp.float32)
    # Bias + ReLU in f32 on the VPU.  b1 is (1, 128), broadcasts over rows.
    h = jnp.maximum(h + b1_ref[...], 0.0)
    # Dropout(p=0.1) in eval mode == identity.
    # Second linear: (tB, 128)f32 @ (128, 128)f32 -> (tB, 128), lane-dense.
    out = jnp.dot(h, w2_ref[...], preferred_element_type=jnp.float32)
    out = out + b2_ref[...]          # b2 is (1, 128), zero-padded past col 33
    o_ref[...] = out.astype(o_ref.dtype)


def my_res_model_forward(x, w1, b1, w2, b2, *, tile_b=512):
    """x: (B, 512) float32.  Returns (B, 33) float32 (eval-mode forward)."""
    B, D = x.shape
    assert D == IN_DIM

    # ---- choose batch tile -------------------------------------------------
    # multiple of 8 (sublane), no larger than the (rounded-up) batch, and keep
    # at least 2 grid steps when the batch allows it (v7x has 2 TensorCores
    # and shards "parallel" grid axes across them).
    tile = min(tile_b, _round_up(B, 8))
    if B >= 16:
        tile = min(tile, _round_up(pl.cdiv(B, 2), 8))
    tile = max(8, (tile // 8) * 8)

    b_pad = _round_up(B, tile)
    grid = (b_pad // tile,)

    # ---- layout / dtype plumbing (done once in the wrapper) ----------------
    # Stream x and W1 as bf16 (halves HBM bytes on the dominant x stream);
    # accumulation stays f32 inside the kernel.
    x_in = x.astype(jnp.bfloat16)
    if b_pad != B:
        x_in = jnp.pad(x_in, ((0, b_pad - B), (0, 0)))
    w1_in = w1.astype(jnp.bfloat16)
    b1_2d = b1.astype(jnp.float32).reshape(1, HID_DIM)
    # Pad W2/b2 to a lane-dense 128-wide output slab (zero padding -> padded
    # output columns are exactly b2_pad = 0 and get sliced off below).
    w2_in = jnp.zeros((HID_DIM, OUT_PAD), jnp.float32).at[:, :LEN_LABELS].set(
        w2.astype(jnp.float32))
    b2_2d = jnp.zeros((1, OUT_PAD), jnp.float32).at[:, :LEN_LABELS].set(
        b2.astype(jnp.float32))

    out_padded = pl.pallas_call(
        _mlp_kernel,
        out_shape=jax.ShapeDtypeStruct((b_pad, OUT_PAD), jnp.float32),
        grid_spec=pltpu.PrefetchScalarGridSpec(
            num_scalar_prefetch=0,
            grid=grid,
            in_specs=[
                pl.BlockSpec((tile, IN_DIM), lambda i: (i, 0)),        # x tile
                pl.BlockSpec((IN_DIM, HID_DIM), lambda i: (0, 0)),     # W1 (resident)
                pl.BlockSpec((1, HID_DIM), lambda i: (0, 0)),          # b1
                pl.BlockSpec((HID_DIM, OUT_PAD), lambda i: (0, 0)),    # W2 padded
                pl.BlockSpec((1, OUT_PAD), lambda i: (0, 0)),          # b2 padded
            ],
            out_specs=pl.BlockSpec((tile, OUT_PAD), lambda i: (i, 0)),
        ),
        compiler_params=pltpu.CompilerParams(
            dimension_semantics=("parallel",)),
    )(x_in, w1_in, b1_2d, w2_in, b2_2d)

    # Drop batch padding and the 95 padded output lanes.
    return out_padded[:B, :LEN_LABELS]


def init_params(key):
    """Deterministic parameter init (PyTorch-like uniform fan-in bounds)."""
    k1, k2, k3, k4 = jax.random.split(key, 4)
    bound1 = 1.0 / (IN_DIM ** 0.5)
    bound2 = 1.0 / (HID_DIM ** 0.5)
    w1 = jax.random.uniform(k1, (IN_DIM, HID_DIM), jnp.float32, -bound1, bound1)
    b1 = jax.random.uniform(k2, (HID_DIM,), jnp.float32, -bound1, bound1)
    w2 = jax.random.uniform(k3, (HID_DIM, LEN_LABELS), jnp.float32, -bound2, bound2)
    b2 = jax.random.uniform(k4, (LEN_LABELS,), jnp.float32, -bound2, bound2)
    return w1, b1, w2, b2


if __name__ == "__main__":
    key = jax.random.PRNGKey(0)
    kx, kp = jax.random.split(key)

    # Small demo batch that is NOT a multiple of the tile, to exercise the
    # padding path and still produce a 2-step parallel grid.
    B = 20
    x = jax.random.normal(kx, (B, IN_DIM), dtype=jnp.float32)
    w1, b1, w2, b2 = init_params(kp)

    out = my_res_model_forward(x, w1, b1, w2, b2)
    out = jax.block_until_ready(out)
    assert out.shape == (B, LEN_LABELS)

    # Reference in plain JAX, mirroring the kernel's bf16 streaming of x/W1
    # (eval-mode dropout == identity).
    xb = x.astype(jnp.bfloat16).astype(jnp.float32)
    w1b = w1.astype(jnp.bfloat16).astype(jnp.float32)
    h_ref = jnp.maximum(xb @ w1b + b1, 0.0)
    ref = h_ref @ w2 + b2
    assert jnp.allclose(out, ref, atol=5e-3, rtol=5e-3), "mismatch vs reference"

    print("KERNEL_OK")
</pallas_src>

<mosaic_0001>
module attributes {stable_mosaic.version = 11 : i64} {
  func.func @_mlp_kernel(%arg0: i32, %arg1: memref<16x512xbf16, #tpu.memory_space<vmem>>, %arg2: memref<512x128xbf16, #tpu.memory_space<vmem>>, %arg3: memref<1x128xf32, #tpu.memory_space<vmem>>, %arg4: memref<128x128xf32, #tpu.memory_space<vmem>>, %arg5: memref<1x128xf32, #tpu.memory_space<vmem>>, %arg6: memref<16x128xf32, #tpu.memory_space<vmem>>) attributes {dimension_semantics = [#tpu.dimension_semantics<parallel>], iteration_bounds = array<i64: 2>, scalar_prefetch = 0 : i64, scratch_operands = 0 : i64, tpu.core_type = #tpu.core_type<tc>, window_params = [{transform_indices = @transform_0, window_bounds = array<i64: 16, 512>}, {pipeline_mode = #tpu.pipeline_mode<synchronous>, transform_indices = @transform_1, window_bounds = array<i64: 512, 128>}, {pipeline_mode = #tpu.pipeline_mode<synchronous>, transform_indices = @transform_2, window_bounds = array<i64: 1, 128>}, {pipeline_mode = #tpu.pipeline_mode<synchronous>, transform_indices = @transform_3, window_bounds = array<i64: 128, 128>}, {pipeline_mode = #tpu.pipeline_mode<synchronous>, transform_indices = @transform_4, window_bounds = array<i64: 1, 128>}, {transform_indices = @transform_5, window_bounds = array<i64: 16, 128>}]} {
    %c0 = arith.constant 0 : index
    %c0_0 = arith.constant 0 : index
    %0 = vector.load %arg1[%c0, %c0_0] : memref<16x512xbf16, #tpu.memory_space<vmem>>, vector<16x512xbf16>
    %c0_1 = arith.constant 0 : index
    %c0_2 = arith.constant 0 : index
    %1 = vector.load %arg2[%c0_1, %c0_2] : memref<512x128xbf16, #tpu.memory_space<vmem>>, vector<512x128xbf16>
    %cst = arith.constant dense<0.000000e+00> : vector<16x128xf32>
    %2 = tpu.matmul %0, %1, %cst {dimension_numbers = #tpu.dot_dimension_numbers<[1], [0], [0], [1], [0, 0, 1, 1], [], []>} : vector<16x512xbf16>, vector<512x128xbf16>, vector<16x128xf32> -> vector<16x128xf32>
    %c0_3 = arith.constant 0 : index
    %c0_4 = arith.constant 0 : index
    %3 = vector.load %arg3[%c0_3, %c0_4] : memref<1x128xf32, #tpu.memory_space<vmem>>, vector<1x128xf32>
    %4 = vector.broadcast %3 : vector<1x128xf32> to vector<16x128xf32>
    %5 = arith.addf %2, %4 : vector<16x128xf32>
    %cst_5 = arith.constant 0.000000e+00 : f32
    %6 = vector.broadcast %cst_5 : f32 to vector<16x128xf32>
    %7 = arith.maximumf %5, %6 : vector<16x128xf32>
    %c0_6 = arith.constant 0 : index
    %c0_7 = arith.constant 0 : index
    %8 = vector.load %arg4[%c0_6, %c0_7] : memref<128x128xf32, #tpu.memory_space<vmem>>, vector<128x128xf32>
    %cst_8 = arith.constant dense<0.000000e+00> : vector<16x128xf32>
    %9 = tpu.matmul %7, %8, %cst_8 {dimension_numbers = #tpu.dot_dimension_numbers<[1], [0], [0], [1], [0, 0, 1, 1], [], []>} : vector<16x128xf32>, vector<128x128xf32>, vector<16x128xf32> -> vector<16x128xf32>
    %c0_9 = arith.constant 0 : index
    %c0_10 = arith.constant 0 : index
    %10 = vector.load %arg5[%c0_9, %c0_10] : memref<1x128xf32, #tpu.memory_space<vmem>>, vector<1x128xf32>
    %11 = vector.broadcast %10 : vector<1x128xf32> to vector<16x128xf32>
    %12 = arith.addf %9, %11 : vector<16x128xf32>
    %c0_11 = arith.constant 0 : index
    %c0_12 = arith.constant 0 : index
    %13 = vector.load %arg6[%c0_11, %c0_12] : memref<16x128xf32, #tpu.memory_space<vmem>>, vector<16x128xf32>
    tpu.vector_store %arg6[%c0_11, %c0_12], %12 {strides = array<i32>} : memref<16x128xf32, #tpu.memory_space<vmem>>, vector<16x128xf32>,
    return
  }
  func.func @transform_0(%arg0: i32) -> (i32, i32) {
    %c0_i32 = arith.constant 0 : i32
    %c0_i32_0 = arith.constant 0 : i32
    return %arg0, %c0_i32 : i32, i32
  }
  func.func @transform_1(%arg0: i32) -> (i32, i32) {
    %c0_i32 = arith.constant 0 : i32
    %c0_i32_0 = arith.constant 0 : i32
    %c0_i32_1 = arith.constant 0 : i32
    return %c0_i32, %c0_i32_0 : i32, i32
  }
  func.func @transform_2(%arg0: i32) -> (i32, i32) {
    %c0_i32 = arith.constant 0 : i32
    %c0_i32_0 = arith.constant 0 : i32
    %c0_i32_1 = arith.constant 0 : i32
    return %c0_i32, %c0_i32_0 : i32, i32
  }
  func.func @transform_3(%arg0: i32) -> (i32, i32) {
    %c0_i32 = arith.constant 0 : i32
    %c0_i32_0 = arith.constant 0 : i32
    %c0_i32_1 = arith.constant 0 : i32
    return %c0_i32, %c0_i32_0 : i32, i32
  }
  func.func @transform_4(%arg0: i32) -> (i32, i32) {
    %c0_i32 = arith.constant 0 : i32
    %c0_i32_0 = arith.constant 0 : i32
    %c0_i32_1 = arith.constant 0 : i32
    return %c0_i32, %c0_i32_0 : i32, i32
  }
  func.func @transform_5(%arg0: i32) -> (i32, i32) {
    %c0_i32 = arith.constant 0 : i32
    %c0_i32_0 = arith.constant 0 : i32
    return %arg0, %c0_i32 : i32, i32
  }
}

</mosaic_0001>

<bundles_post_ra>
// kernel: tpu_custom_call.1
= control target key start
LH: loop header
LB: loop body
LE: loop exit
PB: predicated region body
PF: predicated region fallthrough
CT: control target
= control target key end

     0   :  { %10 = vsyncpa [#allocation3], 0  ;;  %s1602_s0 = inlined_call_operand.hbm [shape: bf16[32,512], index: 0, kind: input, shape index: {}]   ;;  %s1603_s1 = inlined_call_operand.hbm [shape: bf16[512,128], index: 1, kind: input, shape index: {}]   ;;  %s1604_s2 = inlined_call_operand.vmem [shape: f32[1,128], index: 2, kind: input, shape index: {}]   ;;  %s1605_s3 = inlined_call_operand.hbm [shape: f32[128,128], index: 3, kind: input, shape index: {}]   ;;  %s1606_s4 = inlined_call_operand.vmem [shape: f32[1,128], index: 4, kind: input, shape index: {}]   ;;  %s1607_s5 = inlined_call_operand.hbm [shape: f32[32,128], index: 5, kind: output, shape index: {}]  }
   0x1   :  { %12 = vsyncpa [#allocation3 + $0x1], 0 }
   0x2   :  { %13 = vsyncpa [#allocation6], 0 }
   0x3   :  { %14 = vsyncpa [#allocation4], 0 }
   0x4   :  { %16 = vsyncpa [#allocation4 + $0x1], 0  ;;  %s1355_s18 = smov 0   ;;  %s1357_s19 = smov 0  }
   0x5   :  { %s1359_s20 = smov 0   ;;  %s1361_s21 = smov 0  }
   0x6 LB: > { %s1376_s22 = sadd.s32 4294967295, %s1311_s21   ;;  %s853_s23 = sadd.s32 4294967294, %s1311_s21   ;;  %s1311_s21 = sphi %s1361_s21, %s1627_s21   ;;  %s1307_s20 = sphi %s1359_s20, %s1626_s20   ;;  %s1303_s19 = sphi %s1357_s19, %s1625_s19   ;;  %s1299_s18 = sphi %s1355_s18, %s1624_s18  }
   0x7   : > { %p42_p0 = scmp.ne.s32.totalorder %s1303_s19, %s1299_s18  ;;  %p1608_p1 = scmp.eq.s32.totalorder %s1376_s22, 0 }
   0x8   : > { %p156_p3 = scmp.eq.s32.totalorder %s853_s23, 1  ;;  %p854_p5 = scmp.ge.s32.totalorder %s1311_s21, 1 }
   0x9   : > { %p1385_p4 = por %p1608_p1, %p42_p0  ;;  %p163_p7 = scmp.lt.s32.totalorder %s1311_s21, 3 }
   0xa   : > { %p1390_p6 = por %p156_p3, %p42_p0  ;;  %s1313_s27 = smov [#allocation5]  }
   0xb   : > { %s1611_s24 = scalar_select %p1385_p4, 1, 0 }
   0xc   : > { %s1612_s25 = scalar_select %p1390_p6, 1, 0 }
   0xd   : > { %p1395_p8 = pnand %p854_p5, %p163_p7  ;;  %s175_s28 = sshll.u32 %s1313_s27, 4  ;;  %s1399_s28 = int_to_ptr.vmem [resolvable:$true] %s175_s28 }
   0xe   : > { %s1314_s30 = smov [#allocation7]   ;;  %s1155_s9 = scalar_lea.hbm %s1603_s1, 4096 }
   0xf   : > { %p1054_p9 = pneg %p1395_p8  ;;  %s191_s6 = sshll.u32 %s1314_s30, 4  ;;  %s1410_s6 = int_to_ptr.vmem [resolvable:$true] %s191_s6 }
  0x10   : > { %p1156_p12 = scmp.ne.s32.totalorder %s1603_s1, %s1155_s9  ;;  %p1162_p5 = scmp.lt.u32.totalorder %s1155_s9, %s1603_s1 }
  0x11   : > { %p1406_p11 = pnand %p1054_p9, %p1608_p1 }
  0x13   : > { %p1157_p13 = pneg %p1406_p11 }
  0x15   : > { %p1158_p0 = pnand %p1157_p13, %p1156_p12 }
  0x17   : > { %p1159_p3 = pneg %p1158_p0 }
  0x19   : > { %p1164_p7 = pnand %p1162_p5, %p1159_p3 }
  0x1b   : > { %1167 = shalt.err (!%p1164_p7)
}
  0x1c   : > { %s1168_s14 = scalar_lea.vmem %s1399_s28, 4096  ;;  %p1176_p2 = scmp.lt.s32.totalorder %s1399_s28, %s1399_s28 }
  0x1d   : > { %p1169_p9 = scmp.ne.s32.totalorder %s1399_s28, %s1168_s14  ;;  %p1177_p12 = scmp.lt.s32.totalorder %s1168_s14, %s1168_s14 }
  0x1f   : > { %p1171_p10 = pnand %p1169_p9, %p1157_p13  ;;  %p1178_p0 = por %p1177_p12, %p1176_p2 }
  0x21   : > { %p1172_p1 = pneg %p1171_p10 }
  0x23   : > { %p1179_p6 = pnand %p1178_p0, %p1172_p1 }
  0x25   : > { %1182 = shalt.err (!%p1179_p6)
}
  0x26   : > { %s1315_s15 = smov 64   ;;  %s1316_s16 = smov 4  }
  0x27   : > { %1057 = dma.hbm_to_vmem [thread:$0]  (!%p1406_p11), %s1603_s1, 4096, %s1399_s28, [#allocation6], %s1315_s15, %s1315_s15, %s1316_s16  }
  0x28   : > { %s1183_s7 = scalar_lea.hbm %s1605_s3, 2048 }
  0x29   : > { %p1184_p2 = scmp.ne.s32.totalorder %s1605_s3, %s1183_s7  ;;  %p1190_p10 = scmp.lt.u32.totalorder %s1183_s7, %s1605_s3 }
  0x2b   : > { %p1186_p1 = pnand %p1184_p2, %p1157_p13 }
  0x2d   : > { %p1187_p6 = pneg %p1186_p1 }
  0x2f   : > { %p1192_p3 = pnand %p1190_p10, %p1187_p6 }
  0x31   : > { %1195 = shalt.err (!%p1192_p3)
}
  0x32   : > { %s1196_s28 = scalar_lea.vmem %s1410_s6, 2048  ;;  %p1204_p12 = scmp.lt.s32.totalorder %s1410_s6, %s1410_s6 }
  0x33   : > { %p1197_p5 = scmp.ne.s32.totalorder %s1410_s6, %s1196_s28  ;;  %p1205_p0 = scmp.lt.s32.totalorder %s1196_s28, %s1196_s28 }
  0x35   : > { %p1199_p7 = pnand %p1197_p5, %p1157_p13  ;;  %p1206_p2 = por %p1205_p0, %p1204_p12 }
  0x37   : > { %p1200_p9 = pneg %p1199_p7 }
  0x39   : > { %p1207_p1 = pnand %p1206_p2, %p1200_p9 }
  0x3b   : > { %1210 = shalt.err (!%p1207_p1)
}
  0x3c   : > { %s1317_s12 = smov 128   ;;  %s1318_s13 = smov 8  }
  0x3d   : > { %1060 = dma.hbm_to_vmem [thread:$0]  (!%p1406_p11), %s1605_s3, 2048, %s1410_s6, [#allocation6], %s1317_s12, %s1317_s12, %s1318_s13  }
  0x3e   : > { %s1465_s16 = sadd.s32 1, %s1311_s21   ;;  %s29_s23 = sadd.s32 1, %s1307_s20 }
  0x3f   : > { %s26_s17 = ssub.s32 %s1311_s21, %s1465_s16  ;;  %p36_p6 = scmp.ne.s32.totalorder %s1307_s20, %s1303_s19 }
  0x40   : > { %p27_p13 = scmp.eq.s32.totalorder %s26_s17, 0  ;;  %p37_p10 = scmp.eq.s32.totalorder %s1311_s21, 0 }
  0x41   : > { %p1615_p5 = scmp.eq.s32.totalorder %s1376_s22, 1  ;;  %p1071_p9 = scmp.lt.s32.totalorder %s1311_s21, 2 }
  0x42   : > { %s1474_s27 = scalar_select %p27_p13, %s1307_s20, %s29_s23  }
  0x43   : > { %p38_p3 = por %p37_p10, %p36_p6  ;;  %p1478_p7 = por %p1615_p5, %p36_p6 }
  0x44   : > { %s208_s29 = sand.u32 1, %s1307_s20   ;;  %s911_s6 = sshll.u32 %s1311_s21, 9 }
  0x45   : > { %s1616_s30 = scalar_select %p1478_p7, 1, 0 }
  0x46   : > { %s858_s7 = sshll.u32 %s208_s29, 5  ;;  %s1488_s10 = scalar_lea.hbm %s1602_s0, %s911_s6 }
  0x47   : > { %s212_s11 = scalar_lea.vmem [#allocation2], %s858_s7  ;;  %p1492_p11 = pnand %p1071_p9, %p38_p3 }
  0x48   : > { %s220_s28 = sshll.u32 %s212_s11, 4  ;;  %s1496_s13 = scalar_lea.sflag [#allocation3], %s208_s29  ;;  %s1490_s28 = int_to_ptr.vmem [resolvable:$true] %s220_s28 }
  0x49   : > { %s1211_s14 = scalar_lea.hbm %s1488_s10, 512  ;;  %p1213_p0 = pneg %p1492_p11 }
  0x4a   : > { %p1212_p12 = scmp.ne.s32.totalorder %s1488_s10, %s1211_s14  ;;  %s1216_s23 = scalar_lea.hbm %s1602_s0, 1024 }
  0x4b   : > { %p1217_p13 = scmp.lt.u32.totalorder %s1488_s10, %s1602_s0  ;;  %p1218_p6 = scmp.lt.u32.totalorder %s1216_s23, %s1211_s14 }
  0x4c   : > { %p1214_p2 = pnand %p1213_p0, %p1212_p12  ;;  %p1220_p3 = scmp.lt.u32.totalorder %s1211_s14, %s1488_s10 }
  0x4d   : > { %p1219_p10 = por %p1218_p6, %p1217_p13 }
  0x4e   : > { %p1215_p1 = pneg %p1214_p2 }
  0x4f   : > { %p1221_p5 = por %p1220_p3, %p1219_p10 }
  0x51   : > { %p1222_p9 = pnand %p1221_p5, %p1215_p1 }
  0x53   : > { %1225 = shalt.err (!%p1222_p9)
}
  0x54   : > { %s1226_s29 = scalar_lea.vmem %s1490_s28, 512  ;;  %s1319_s8 = smov [#allocation2]  }
  0x55   : > { %p1227_p12 = scmp.ne.s32.totalorder %s1490_s28, %s1226_s29  ;;  %s1231_s9 = sshll.u32 %s1319_s8, 4  ;;  %s1232_s9 = int_to_ptr.vmem [resolvable:$false] %s1231_s9 }
  0x56   : > { %s1233_s11 = scalar_lea.vmem %s1232_s9, 1024  ;;  %p1234_p4 = scmp.lt.s32.totalorder %s1490_s28, %s1232_s9 }
  0x57   : > { %p1229_p2 = pnand %p1227_p12, %p1213_p0  ;;  %p1235_p13 = scmp.lt.s32.totalorder %s1233_s11, %s1226_s29 }
  0x59   : > { %p1230_p7 = pneg %p1229_p2  ;;  %p1236_p6 = por %p1235_p13, %p1234_p4 }
  0x5b   : > { %p1237_p10 = pnand %p1236_p6, %p1230_p7 }
  0x5d   : > { %1240 = shalt.err (!%p1237_p10)
}
  0x5e   : > { %s1320_s14 = smov 256   ;;  %s1321_s15 = smov 16  }
  0x5f   : > { %1064 = dma.hbm_to_vmem [thread:$0]  (!%p1492_p11), %s1488_s10, 512, %s1490_s28, %s1496_s13, %s1320_s14, %s1320_s14, %s1321_s15  }
  0x60   : > { %232 = sbr.rel (%p1395_p8) target bundleno = 594 (0x252), region = 40  ;;  %s1527_s17 = sand.u32 (!%p1395_p8), 1, %s1303_s19  }
  0x61   : > { %s863_s23 = sshll.u32 (!%p1395_p8), %s1527_s17, 5  ;;  %s235_s7 = scalar_lea.sflag (!%p1395_p8), [#allocation3], %s1527_s17 }
  0x62   : > { %s1531_s6 = scalar_lea.vmem (!%p1395_p8), [#allocation2], %s863_s23  ;;  %p1618_p4 = scmp.ne.s32.totalorder (!%p1395_p8), %s1611_s24, 0 }
  0x67   : > { %1286 = dma.done.wait (%p1618_p4), %s235_s7, 512  }
  0x68   : > { %1288 = vsyncadd (%p1618_p4), %s235_s7, 4294966784  ;;  %p1619_p7 = scmp.eq.s32.totalorder %s1376_s22, 0 }
  0x6a   : > { %1290 = dma.done.wait (%p1619_p7), [#allocation6], 6144   ;;  %p1620_p8 = pmov %p1619_p7 }
  0x6b   : > { %v1117_v0 = vld [vmem:[#allocation5 + $0x40] sm:$0xff]   ;;  %v1121_v4 = vld [vmem:[#allocation5 + $0x48] sm:$0xff]   ;;  %v1125_v8 = vld [vmem:[#allocation5 + $0x50] sm:$0xff]   ;;  %s866_s10 = sshll.u32 %s1527_s17, 4  ;;  %s912_s8 = sshll.u32 %s1376_s22, 8 }
  0x6c   : > { %1292 = vsyncadd (%p1620_p8), [#allocation6], 4294961152  ;;  %v1118_v1 = vld [vmem:[#allocation5 + $0xc0] sm:$0xff]   ;;  %913 = vmatprep.subr.bf16.mxu0 %v1117_v0  ;;  %v1122_v5 = vld [vmem:[#allocation5 + $0xc8] sm:$0xff]   ;;  %s272_s28 = scalar_lea.vmem [#allocation8], %s866_s10  ;;  %s1558_s14 = scalar_lea.hbm %s1607_s5, %s912_s8 }
  0x6d   : > { %v1119_v2 = vld [vmem:[#allocation5] sm:$0xff]   ;;  %935 = vmatprep.subr.bf16.mxu1 %v1118_v1  ;;  %v1123_v6 = vld [vmem:[#allocation5 + $0x8] sm:$0xff]   ;;  %v1126_v9 = vld [vmem:[#allocation5 + $0xd0] sm:$0xff]   ;;  %s761_s12 = sshll.u32 %s272_s28, 4  ;;  %s748_s15 = scalar_lea.sflag [#allocation4], %s1527_s17  ;;  %s1553_s12 = int_to_ptr.vmem [resolvable:$true] %s761_s12 }
  0x6e   : > { %v1120_v3 = vld [vmem:[#allocation5 + $0x80] sm:$0xff]   ;;  %914 = vmatpush3.bf16.msra.mxu0 %v1119_v2  ;;  %v1124_v7 = vld [vmem:[#allocation5 + $0x88] sm:$0xff]   ;;  %v1127_v10 = vld [vmem:[#allocation5 + $0x10] sm:$0xff]   ;;  %s1241_s23 = scalar_lea.vmem %s1553_s12, 256  ;;  %p1621_p0 = scmp.ne.s32.totalorder %s1616_s30, 0 }
  0x6f   : > { %936 = vmatpush3.bf16.msra.mxu1 %v1120_v3  ;;  %915 = vmatprep.subr.bf16.mxu0 %v1121_v4  ;;  %v1128_v11 = vld [vmem:[#allocation5 + $0x90] sm:$0xff]   ;;  %v1129_v12 = vld [vmem:[#allocation5 + $0x58] sm:$0xff]   ;;  %v1133_v16 = vld [vmem:[#allocation5 + $0x60] sm:$0xff]   ;;  %p1242_p11 = scmp.ne.s32.totalorder %s1553_s12, %s1241_s23  ;;  %s1322_s22 = smov [#allocation8]  }
  0x70   : > { %937 = vmatprep.subr.bf16.mxu1 %v1122_v5  ;;  %v1130_v13 = vld [vmem:[#allocation5 + $0xd8] sm:$0xff]   ;;  %v1134_v17 = vld [vmem:[#allocation5 + $0xe0] sm:$0xff]   ;;  %v1137_v20 = vld [vmem:[#allocation5 + $0x68] sm:$0xff]   ;;  %s1245_s7 = sshll.u32 %s1322_s22, 4  ;;  %s1246_s7 = int_to_ptr.vmem [resolvable:$false] %s1245_s7 }
  0x71   : > { %v1131_v14 = vld [vmem:[#allocation5 + $0x18] sm:$0xff]   ;;  %v1135_v18 = vld [vmem:[#allocation5 + $0x20] sm:$0xff]   ;;  %v1138_v21 = vld [vmem:[#allocation5 + $0xe8] sm:$0xff]   ;;  %p1243_p1 = pnand %p1242_p11, %p1621_p0  ;;  %p1248_p5 = scmp.lt.s32.totalorder %s1553_s12, %s1246_s7 }
  0x72   : > { %916 = vmatpush3.bf16.msra.mxu0 %v1123_v6  ;;  %v1132_v15 = vld [vmem:[#allocation5 + $0x98] sm:$0xff]   ;;  %v1136_v19 = vld [vmem:[#allocation5 + $0xa0] sm:$0xff]   ;;  %v1139_v22 = vld [vmem:[#allocation5 + $0x28] sm:$0xff]  }
  0x73   : > { %938 = vmatpush3.bf16.msra.mxu1 %v1124_v7  ;;  %917 = vmatprep.subr.bf16.mxu0 %v1125_v8  ;;  %v1140_v23 = vld [vmem:[#allocation5 + $0xa8] sm:$0xff]   ;;  %v1141_v24 = vld [vmem:[#allocation5 + $0x70] sm:$0xff]   ;;  %v1145_v28 = vld [vmem:[#allocation5 + $0x78] sm:$0xff]   ;;  %p1244_p3 = pneg %p1243_p1 }
  0x74   : > { %939 = vmatprep.subr.bf16.mxu1 %v1126_v9  ;;  %v1142_v25 = vld [vmem:[#allocation5 + $0xf0] sm:$0xff]   ;;  %v1146_v29 = vld [vmem:[#allocation5 + $0xf8] sm:$0xff]   ;;  %v647_v36 = vld [vmem:[#allocation7] sm:$0xff] }
  0x75   : > { %v1143_v26 = vld [vmem:[#allocation5 + $0x30] sm:$0xff]   ;;  %v1147_v30 = vld [vmem:[#allocation5 + $0x38] sm:$0xff]   ;;  %v648_v37 = vld [vmem:[#allocation7 + $0x8] sm:$0xff] }
  0x76   : > { %918 = vmatpush3.bf16.msra.mxu0 %v1127_v10  ;;  %v1144_v27 = vld [vmem:[#allocation5 + $0xb0] sm:$0xff]   ;;  %v1148_v31 = vld [vmem:[#allocation5 + $0xb8] sm:$0xff]   ;;  %v1010_v40 = vpack.c.bf16 %v648_v37, %v647_v36  ;;  %v651_v42 = vld [vmem:[#allocation7 + $0x20] sm:$0xff] }
  0x77   : > { %940 = vmatpush3.bf16.msra.mxu1 %v1128_v11  ;;  %919 = vmatprep.subr.bf16.mxu0 %v1129_v12  ;;  %v1149_v32 = vld [vmem:[%s1531_s6] ss:$16 sps:$4 sm:$0xff]   ;;  %v1151_v33 = vld [vmem:[%s1531_s6 + $0x4] ss:$16 sps:$4 sm:$0xff]   ;;  %v1152_v34 = vld [vmem:[%s1531_s6 + $0x8] ss:$16 sps:$4 sm:$0xff]  }
  0x78   : > { %941 = vmatprep.subr.bf16.mxu1 %v1130_v13  ;;  %v1154_v35 = vld [vmem:[%s1531_s6 + $0xc] ss:$16 sps:$4 sm:$0xff]   ;;  %595 = vmatprep.mubr.bf16.mxu0 %v1151_v33  ;;  %v649_v38 = vld [vmem:[#allocation7 + $0x10] sm:$0xff]  ;;  %v655_v48 = vld [vmem:[#allocation7 + $0x40] sm:$0xff]  ;;  %s1247_s6 = scalar_lea.vmem %s1246_s7, 512 }
  0x79   : > { %v650_v39 = vld [vmem:[#allocation7 + $0x18] sm:$0xff]  ;;  %636 = vmatprep.mubr.bf16.mxu1 %v1154_v35  ;;  %v652_v43 = vld [vmem:[#allocation7 + $0x28] sm:$0xff]  ;;  %v653_v45 = vld [vmem:[#allocation7 + $0x30] sm:$0xff]  ;;  %p1249_p9 = scmp.lt.s32.totalorder %s1247_s6, %s1241_s23 }
  0x7a   : > { %920 = vmatpush3.bf16.msra.mxu0 %v1131_v14  ;;  %v1014_v41 = vpack.c.bf16 %v650_v39, %v649_v38  ;;  %v1018_v44 = vpack.c.bf16 %v652_v43, %v651_v42  ;;  %v654_v46 = vld [vmem:[#allocation7 + $0x38] sm:$0xff]  ;;  %v656_v49 = vld [vmem:[#allocation7 + $0x48] sm:$0xff]  ;;  %v657_v51 = vld [vmem:[#allocation7 + $0x50] sm:$0xff] }
  0x7b   : > { %942 = vmatpush3.bf16.msra.mxu1 %v1132_v15  ;;  %921 = vmatprep.subr.bf16.mxu0 %v1133_v16  ;;  %v1022_v47 = vpack.c.bf16 %v654_v46, %v653_v45  ;;  %v1026_v50 = vpack.c.bf16 %v656_v49, %v655_v48  ;;  %v658_v52 = vld [vmem:[#allocation7 + $0x58] sm:$0xff]  ;;  %v659_v54 = vld [vmem:[#allocation7 + $0x60] sm:$0xff]  ;;  %v660_v55 = vld [vmem:[#allocation7 + $0x68] sm:$0xff]  ;;  %p1250_p12 = por %p1249_p9, %p1248_p5 }
  0x7c   : > { %943 = vmatprep.subr.bf16.mxu1 %v1134_v17  ;;  %v1030_v53 = vpack.c.bf16 %v658_v52, %v657_v51  ;;  %v1034_v56 = vpack.c.bf16 %v660_v55, %v659_v54  ;;  %v661_v57 = vld [vmem:[#allocation7 + $0x70] sm:$0xff]  ;;  %v662_v58 = vld [vmem:[#allocation7 + $0x78] sm:$0xff]  ;;  %v867_v62 = vld [vmem:[%s1604_s2] ss:$0 sm:$0xff] }
  0x7d   : > { %v1038_v59 = vpack.c.bf16 %v662_v58, %v661_v57  ;;  %v904_v15 = vld [vmem:[%s1606_s4] ss:$0 sm:$0xff]  ;;  %p1251_p2 = pnand %p1250_p12, %p1244_p3 }
  0x7e   : > { %922 = vmatpush3.bf16.msra.mxu0 %v1135_v18 }
  0x7f   : > { %944 = vmatpush3.bf16.msra.mxu1 %v1136_v19  ;;  %923 = vmatprep.subr.bf16.mxu0 %v1137_v20 }
  0x80   : > { %945 = vmatprep.subr.bf16.mxu1 %v1138_v21 }
  0x82   : > { %924 = vmatpush3.bf16.msra.mxu0 %v1139_v22 }
  0x83   : > { %946 = vmatpush3.bf16.msra.mxu1 %v1140_v23  ;;  %925 = vmatprep.subr.bf16.mxu0 %v1141_v24 }
  0x84   : > { %947 = vmatprep.subr.bf16.mxu1 %v1142_v25 }
  0x86   : > { %926 = vmatpush3.bf16.msra.mxu0 %v1143_v26 }
  0x87   : > { %948 = vmatpush3.bf16.msra.mxu1 %v1144_v27  ;;  %927 = vmatprep.subr.bf16.mxu0 %v1145_v28 }
  0x88   : > { %949 = vmatprep.subr.bf16.mxu1 %v1146_v29 }
  0x8a   : > { %928 = vmatpush3.bf16.msra.mxu0 %v1147_v30 }
  0x8b   : > { %950 = vmatpush3.bf16.msra.mxu1 %v1148_v31  ;;  %1011 = vmatprep.subr.bf16.mxu0 %v1010_v40 }
  0x8d   : > { %596 = vmatmul.mubr.bf16.vlgmr.msra.gmra.mrb[0].mxu0 %v1149_v32 }
  0x8e   : > { %637 = vmatmul.mubr.bf16.vlgmr.msra.gmra.mrb[0].mxu1 %v1152_v34  ;;  %1013 = vmatpush3.bf16.msra.mxu0 %v1010_v40 }
  0x8f   : > { %1015 = vmatprep.subr.bf16.mxu0 %v1014_v41 }
  0x92   : > { %1017 = vmatpush3.bf16.msra.mxu0 %v1014_v41 }
  0x93   : > { %1019 = vmatprep.subr.bf16.mxu0 %v1018_v44 }
  0x96   : > { %1021 = vmatpush3.bf16.msra.mxu0 %v1018_v44 }
  0x97   : > { %1023 = vmatprep.subr.bf16.mxu0 %v1022_v47 }
  0x9a   : > { %1025 = vmatpush3.bf16.msra.mxu0 %v1022_v47 }
  0x9b   : > { %1027 = vmatprep.subr.bf16.mxu0 %v1026_v50 }
  0x9e   : > { %1029 = vmatpush3.bf16.msra.mxu0 %v1026_v50 }
  0x9f   : > { %1031 = vmatprep.subr.bf16.mxu0 %v1030_v53 }
  0xa2   : > { %1033 = vmatpush3.bf16.msra.mxu0 %v1030_v53 }
  0xa3   : > { %1035 = vmatprep.subr.bf16.mxu0 %v1034_v56 }
  0xa6   : > { %1037 = vmatpush3.bf16.msra.mxu0 %v1034_v56 }
  0xa7   : > { %1039 = vmatprep.subr.bf16.mxu0 %v1038_v59 }
  0xaa   : > { %1041 = vmatpush3.bf16.msra.mxu0 %v1038_v59 }
 0x160   : > { %v929_v60 = vpop.f32.mrb[0].mxu0 }
 0x161   : > { %v951_v61 = vpop.f32.mrb[0].mxu1  ;;  %v930_v63 = vpop.f32.mrb[1].mxu0 }
 0x162   : > { %v931_v0 = vadd.f32 %v930_v63, %v929_v60  ;;  %v952_v1 = vpop.f32.mrb[1].mxu1  ;;  %v932_v2 = vpop.f32.mrb[2].mxu0 }
 0x163   : > { %v953_v3 = vadd.f32 %v952_v1, %v951_v61  ;;  %v954_v4 = vpop.f32.mrb[2].mxu1  ;;  %v933_v5 = vpop.f32.mrb[3].mxu0 }
 0x164   : > { %v598_v6 = vadd.f32 %v931_v0, %v867_v62  ;;  %v934_v7 = vadd.f32 %v933_v5, %v932_v2  ;;  %v955_v8 = vpop.f32.mrb[3].mxu1 }
 0x165   : > { %v956_v9 = vadd.f32 %v955_v8, %v954_v4 }
 0x166   : > { %v639_v10 = vadd.f32 %v953_v3, %v598_v6  ;;  %v601_v11 = vadd.f32 %v934_v7, %v867_v62 }
 0x168   : > { %v645_v12 = vmax.f32 %v639_v10, 0.0  ;;  %v642_v13 = vadd.f32 %v956_v9, %v601_v11 }
 0x16a   : > { %v646_v14 = vmax.f32 %v642_v13, 0.0  ;;  %1007 = vmatprep.mubr.f32.mxu0 %v645_v12 }
 0x16c   : > { %1008 = vmatmul.mubr.f32.vlgmr.msra.gmra.mrb[4].mxu0 %v646_v14 }
 0x23f   : > { %v1009_v16 = vpop.f32.mrb[4].mxu0 }
 0x240   : > { %v742_v17 = vadd.f32 %v1009_v16, %v904_v15  ;;  %v736_v18 = vpop.f32.mrb[5].mxu0 }
 0x241   : > { %v737_v19 = vadd.f32 %v904_v15, %v736_v18 }
 0x242   : > { %746 = vst [vmem:[%s272_s28 + $0x8] sm:$0xff] %v742_v17 }
 0x243   : > { %745 = vst [vmem:[%s272_s28] sm:$0xff] %v737_v19 }
 0x244   : > { %1254 = shalt.err (!%p1251_p2)
}
 0x245   : > { %s1255_s24 = scalar_lea.hbm %s1558_s14, 256  ;;  %s1259_s28 = scalar_lea.hbm %s1607_s5, 512 }
 0x246   : > { %p1256_p13 = scmp.ne.s32.totalorder %s1558_s14, %s1255_s24  ;;  %p1260_p4 = scmp.lt.u32.totalorder %s1558_s14, %s1607_s5 }
 0x247   : > { %p1261_p7 = scmp.lt.u32.totalorder %s1259_s28, %s1255_s24  ;;  %p1263_p11 = scmp.lt.u32.totalorder %s1255_s24, %s1558_s14 }
 0x248   : > { %p1257_p6 = pnand %p1256_p13, %p1621_p0 }
 0x249   : > { %p1262_p8 = por %p1261_p7, %p1260_p4 }
 0x24a   : > { %p1258_p10 = pneg %p1257_p6 }
 0x24b   : > { %p1264_p1 = por %p1263_p11, %p1262_p8 }
 0x24d   : > { %p1265_p3 = pnand %p1264_p1, %p1258_p10 }
 0x24f   : > { %1268 = shalt.err (!%p1265_p3)
}
 0x250   : > { %s1323_s8 = smov 128   ;;  %s1324_s9 = smov 8  }
 0x251   : > { %1052 = dma.vmem_to_hbm [thread:$0]  (%p1621_p0), %s1553_s12, 256, %s1558_s14, %s748_s15, %s1323_s8, %s1323_s8, %s1324_s9  }
 0x252 PF: > { %s776_s11 = sand.u32 1, %s1299_s18   ;;  %p1622_p5 = scmp.ne.s32.totalorder %s1612_s25, 0 }
 0x253   : > { %p1623_p9 = scmp.ge.s32.totalorder %s1311_s21, 2  ;;  %s777_s23 = scalar_lea.sflag [#allocation4], %s776_s11 }
 0x255   : > { %p1066_p12 = pnand %p1623_p9, %p1622_p5 }
 0x257   : > { %1294 = dma.done.wait (!%p1066_p12), %s777_s23, 256  }
 0x258   : > { %1296 = vsyncadd (!%p1066_p12), %s777_s23, 4294967040  ;;  %p19_p2 = scmp.ge.s32.totalorder %s1465_s16, 4   ;;  %s1624_s18 = smov %s1303_s19 }
 0x259   : > { %s1625_s19 = smov %s1307_s20  ;;  %s1626_s20 = smov %s1474_s27 }
 0x25a   : > { %s1627_s21 = smov %s1465_s16  ;;  %21 = sbr.rel (!%p19_p2) target bundleno = 6 (0x6), region = 93 }
 0x261   :  { %782 = vsyncpa [#allocation3], 1 }
 0x262   :  { %784 = vsyncpa [#allocation3 + $0x1], 1 }
 0x263   :  { %785 = vsyncpa [#allocation6], 1 }
 0x264   :  { %786 = vsyncpa [#allocation4], 1 }
 0x265   :  { %788 = vsyncpa [#allocation4 + $0x1], 1 }

</bundles_post_ra>
